<compile_context>
chip_gen: v7x
topology: tpu7x:2x2x1
jax: 0.10.0
libtpu: 0.0.40
codegen_flags: <defaults>
</compile_context>

<pallas_src>
import functools

import jax
import jax.numpy as jnp
from jax.experimental import pallas as pl
from jax.experimental.pallas import tpu as pltpu


NSLOPE = 0.2          # conv2d_config.leaky_relu_nslope
GATE_NSLOPE = 0.2     # GatedConv internal LeakyReLU slope
PIXELNORM_EPS = 1e-8


def _convact_kernel(x_ref, wv_ref, wg_ref, bv_ref, bg_ref, o_ref, *, H, W, COUT):
    # x_ref : (1, Cin, L)      bf16, padded + row-flattened image, L=(H+3)*(W+2)
    # wv_ref: (9, Cout, Cin)   bf16, per-tap transposed value weights
    # wg_ref: (9, Cout, Cin)   bf16, per-tap transposed gate weights
    # bv_ref: (Cout, 1) f32    value bias
    # bg_ref: (Cout, 1) f32    gate bias
    # o_ref : (1, Cout, H*(W+2)) f32 (2 junk columns per row, dropped by wrapper)
    WP = W + 2
    MP = H * WP

    xv = x_ref[0]                                  # (Cin, L) bf16, loaded once

    acc_v = jnp.zeros((COUT, MP), jnp.float32)
    acc_g = jnp.zeros((COUT, MP), jnp.float32)
    for kh in range(3):
        for kw in range(3):
            t = kh * 3 + kw
            s = kh * WP + kw                       # static lane shift of this tap
            x_tap = xv[:, s:s + MP]                # (Cin, MP) bf16
            acc_v = acc_v + jnp.dot(wv_ref[t], x_tap,
                                    preferred_element_type=jnp.float32)
            acc_g = acc_g + jnp.dot(wg_ref[t], x_tap,
                                    preferred_element_type=jnp.float32)

    acc_v = acc_v + bv_ref[...]
    acc_g = acc_g + bg_ref[...]

    # GatedConv: leaky_relu(value) * sigmoid(gate)
    a = jnp.where(acc_v >= 0, acc_v, GATE_NSLOPE * acc_v)
    g = jax.nn.sigmoid(acc_g)
    z = a * g

    # post-activation LeakyReLU
    z = jnp.where(z >= 0, z, NSLOPE * z)

    # PixelwiseNormalization over the channel (sublane) axis
    inv = jax.lax.rsqrt(jnp.mean(z * z, axis=0, keepdims=True) + PIXELNORM_EPS)
    o_ref[0] = (z * inv).astype(o_ref.dtype)


@jax.jit
def conv_act(x_nchw, weight, bias):
    """x: (N, Cin, H, W); weight: (2*Cout, Cin, 3, 3); bias: (2*Cout,)."""
    n, cin, h, w = x_nchw.shape
    cout2 = weight.shape[0]
    cout = cout2 // 2
    wp = w + 2
    mp = h * wp
    L = (h + 3) * wp

    # Pad H by (1, 2) and W by (1, 1); the extra bottom row gives the largest
    # tap shift room in the flattened layout. Then flatten rows onto the lane
    # axis.  bf16 cast halves the dominant HBM stream of this mem-bound kernel.
    xpad = jnp.pad(x_nchw.astype(jnp.bfloat16), ((0, 0), (0, 0), (1, 2), (1, 1)))
    xflat = xpad.reshape(n, cin, L)

    # Per-tap transposed weights: (9, Cout, Cin), tap index = kh*3 + kw.
    wv = weight[:cout].transpose(2, 3, 0, 1).reshape(9, cout, cin)
    wg = weight[cout:].transpose(2, 3, 0, 1).reshape(9, cout, cin)
    wv = wv.astype(jnp.bfloat16)
    wg = wg.astype(jnp.bfloat16)
    bv = bias[:cout].reshape(cout, 1).astype(jnp.float32)
    bg = bias[cout:].reshape(cout, 1).astype(jnp.float32)

    kernel = functools.partial(_convact_kernel, H=h, W=w, COUT=cout)

    out_p = pl.pallas_call(
        kernel,
        out_shape=jax.ShapeDtypeStruct((n, cout, mp), jnp.float32),
        grid_spec=pltpu.PrefetchScalarGridSpec(
            num_scalar_prefetch=0,
            grid=(n,),
            in_specs=[
                pl.BlockSpec((1, cin, L), lambda i: (i, 0, 0)),
                pl.BlockSpec((9, cout, cin), lambda i: (0, 0, 0)),
                pl.BlockSpec((9, cout, cin), lambda i: (0, 0, 0)),
                pl.BlockSpec((cout, 1), lambda i: (0, 0)),
                pl.BlockSpec((cout, 1), lambda i: (0, 0)),
            ],
            out_specs=pl.BlockSpec((1, cout, mp), lambda i: (i, 0, 0)),
        ),
        compiler_params=pltpu.CompilerParams(
            dimension_semantics=("parallel",),
            vmem_limit_bytes=32 * 1024 * 1024),
    )(xflat, wv, wg, bv, bg)

    # (N, Cout, H, W+2) -> drop the 2 junk columns per row.  Output is already
    # channel-major, so this is the only post-processing (no transpose).
    return out_p.reshape(n, cout, h, wp)[:, :, :, :w]


def _reference(x_nchw, weight, bias):
    """Plain-JAX reference with the same bf16 operand quantization / f32 accum."""
    xb = x_nchw.astype(jnp.bfloat16).astype(jnp.float32)
    wb = weight.astype(jnp.bfloat16).astype(jnp.float32)
    hh = jax.lax.conv_general_dilated(
        xb, wb, window_strides=(1, 1), padding=((1, 1), (1, 1)),
        dimension_numbers=("NCHW", "OIHW", "NCHW"),
        precision=jax.lax.Precision.HIGHEST)
    hh = hh + bias.reshape(1, -1, 1, 1).astype(jnp.float32)
    c = hh.shape[1] // 2
    a = jnp.where(hh[:, :c] >= 0, hh[:, :c], GATE_NSLOPE * hh[:, :c])
    g = jax.nn.sigmoid(hh[:, c:])
    z = a * g
    z = jnp.where(z >= 0, z, NSLOPE * z)
    inv = jax.lax.rsqrt(jnp.mean(z * z, axis=1, keepdims=True) + PIXELNORM_EPS)
    return z * inv


if __name__ == "__main__":
    N, CIN, H, W = 2, 4, 16, 16
    COUT = 8  # ConvAct out_channels; GatedConv allocates 2*COUT filters

    key = jax.random.PRNGKey(0)
    kx, kw, kb = jax.random.split(key, 3)
    x = jax.random.normal(kx, (N, CIN, H, W), dtype=jnp.float32)
    weight = jax.random.normal(kw, (2 * COUT, CIN, 3, 3), dtype=jnp.float32) * 0.1
    bias = jax.random.normal(kb, (2 * COUT,), dtype=jnp.float32) * 0.1

    out = jax.block_until_ready(conv_act(x, weight, bias))
    ref = _reference(x, weight, bias)

    assert out.shape == (N, COUT, H, W), out.shape
    max_err = float(jnp.max(jnp.abs(out - ref)))
    # bf16 matmul operands -> tolerance loosened vs. the pure-f32 version.
    assert jnp.allclose(out, ref, rtol=2e-2, atol=2e-2), max_err

    print("KERNEL_OK")
</pallas_src>

<mosaic_0001>
module attributes {stable_mosaic.version = 11 : i64} {
  func.func @_convact_kernel(%arg0: i32, %arg1: memref<1x4x342xbf16, #tpu.memory_space<vmem>>, %arg2: memref<9x8x4xbf16, #tpu.memory_space<vmem>>, %arg3: memref<9x8x4xbf16, #tpu.memory_space<vmem>>, %arg4: memref<8x1xf32, #tpu.memory_space<vmem>>, %arg5: memref<8x1xf32, #tpu.memory_space<vmem>>, %arg6: memref<1x8x288xf32, #tpu.memory_space<vmem>>) attributes {dimension_semantics = [#tpu.dimension_semantics<parallel>], iteration_bounds = array<i64: 2>, scalar_prefetch = 0 : i64, scratch_operands = 0 : i64, tpu.core_type = #tpu.core_type<tc>, window_params = [{transform_indices = @transform_0, window_bounds = array<i64: 1, 4, 342>}, {pipeline_mode = #tpu.pipeline_mode<synchronous>, transform_indices = @transform_1, window_bounds = array<i64: 9, 8, 4>}, {pipeline_mode = #tpu.pipeline_mode<synchronous>, transform_indices = @transform_2, window_bounds = array<i64: 9, 8, 4>}, {pipeline_mode = #tpu.pipeline_mode<synchronous>, transform_indices = @transform_3, window_bounds = array<i64: 8, 1>}, {pipeline_mode = #tpu.pipeline_mode<synchronous>, transform_indices = @transform_4, window_bounds = array<i64: 8, 1>}, {transform_indices = @transform_5, window_bounds = array<i64: 1, 8, 288>}]} {
    %c0 = arith.constant 0 : index
    %c0_0 = arith.constant 0 : index
    %c0_1 = arith.constant 0 : index
    %0 = vector.load %arg1[%c0, %c0_0, %c0_1] : memref<1x4x342xbf16, #tpu.memory_space<vmem>>, vector<1x4x342xbf16>
    %1 = vector.shape_cast %0 : vector<1x4x342xbf16> to vector<4x342xbf16>
    %cst = arith.constant 0.000000e+00 : f32
    %2 = vector.broadcast %cst : f32 to vector<8x288xf32>
    %cst_2 = arith.constant 0.000000e+00 : f32
    %3 = vector.broadcast %cst_2 : f32 to vector<8x288xf32>
    %4 = vector.extract_strided_slice %1 {offsets = [0, 0], sizes = [4, 288], strides = [1, 1]} : vector<4x342xbf16> to vector<4x288xbf16>
    %c0_3 = arith.constant 0 : index
    %c0_4 = arith.constant 0 : index
    %c0_5 = arith.constant 0 : index
    %5 = vector.load %arg2[%c0_3, %c0_4, %c0_5] : memref<9x8x4xbf16, #tpu.memory_space<vmem>>, vector<1x8x4xbf16>
    %6 = vector.shape_cast %5 : vector<1x8x4xbf16> to vector<8x4xbf16>
    %cst_6 = arith.constant dense<0.000000e+00> : vector<8x288xf32>
    %7 = tpu.matmul %6, %4, %cst_6 {dimension_numbers = #tpu.dot_dimension_numbers<[1], [0], [0], [1], [0, 0, 1, 1], [], []>} : vector<8x4xbf16>, vector<4x288xbf16>, vector<8x288xf32> -> vector<8x288xf32>
    %8 = arith.addf %2, %7 : vector<8x288xf32>
    %c0_7 = arith.constant 0 : index
    %c0_8 = arith.constant 0 : index
    %c0_9 = arith.constant 0 : index
    %9 = vector.load %arg3[%c0_7, %c0_8, %c0_9] : memref<9x8x4xbf16, #tpu.memory_space<vmem>>, vector<1x8x4xbf16>
    %10 = vector.shape_cast %9 : vector<1x8x4xbf16> to vector<8x4xbf16>
    %cst_10 = arith.constant dense<0.000000e+00> : vector<8x288xf32>
    %11 = tpu.matmul %10, %4, %cst_10 {dimension_numbers = #tpu.dot_dimension_numbers<[1], [0], [0], [1], [0, 0, 1, 1], [], []>} : vector<8x4xbf16>, vector<4x288xbf16>, vector<8x288xf32> -> vector<8x288xf32>
    %12 = arith.addf %3, %11 : vector<8x288xf32>
    %13 = vector.extract_strided_slice %1 {offsets = [0, 1], sizes = [4, 288], strides = [1, 1]} : vector<4x342xbf16> to vector<4x288xbf16>
    %c1 = arith.constant 1 : index
    %c0_11 = arith.constant 0 : index
    %c0_12 = arith.constant 0 : index
    %14 = vector.load %arg2[%c1, %c0_11, %c0_12] : memref<9x8x4xbf16, #tpu.memory_space<vmem>>, vector<1x8x4xbf16>
    %15 = vector.shape_cast %14 : vector<1x8x4xbf16> to vector<8x4xbf16>
    %cst_13 = arith.constant dense<0.000000e+00> : vector<8x288xf32>
    %16 = tpu.matmul %15, %13, %cst_13 {dimension_numbers = #tpu.dot_dimension_numbers<[1], [0], [0], [1], [0, 0, 1, 1], [], []>} : vector<8x4xbf16>, vector<4x288xbf16>, vector<8x288xf32> -> vector<8x288xf32>
    %17 = arith.addf %8, %16 : vector<8x288xf32>
    %c1_14 = arith.constant 1 : index
    %c0_15 = arith.constant 0 : index
    %c0_16 = arith.constant 0 : index
    %18 = vector.load %arg3[%c1_14, %c0_15, %c0_16] : memref<9x8x4xbf16, #tpu.memory_space<vmem>>, vector<1x8x4xbf16>
    %19 = vector.shape_cast %18 : vector<1x8x4xbf16> to vector<8x4xbf16>
    %cst_17 = arith.constant dense<0.000000e+00> : vector<8x288xf32>
    %20 = tpu.matmul %19, %13, %cst_17 {dimension_numbers = #tpu.dot_dimension_numbers<[1], [0], [0], [1], [0, 0, 1, 1], [], []>} : vector<8x4xbf16>, vector<4x288xbf16>, vector<8x288xf32> -> vector<8x288xf32>
    %21 = arith.addf %12, %20 : vector<8x288xf32>
    %22 = vector.extract_strided_slice %1 {offsets = [0, 2], sizes = [4, 288], strides = [1, 1]} : vector<4x342xbf16> to vector<4x288xbf16>
    %c2 = arith.constant 2 : index
    %c0_18 = arith.constant 0 : index
    %c0_19 = arith.constant 0 : index
    %23 = vector.load %arg2[%c2, %c0_18, %c0_19] : memref<9x8x4xbf16, #tpu.memory_space<vmem>>, vector<1x8x4xbf16>
    %24 = vector.shape_cast %23 : vector<1x8x4xbf16> to vector<8x4xbf16>
    %cst_20 = arith.constant dense<0.000000e+00> : vector<8x288xf32>
    %25 = tpu.matmul %24, %22, %cst_20 {dimension_numbers = #tpu.dot_dimension_numbers<[1], [0], [0], [1], [0, 0, 1, 1], [], []>} : vector<8x4xbf16>, vector<4x288xbf16>, vector<8x288xf32> -> vector<8x288xf32>
    %26 = arith.addf %17, %25 : vector<8x288xf32>
    %c2_21 = arith.constant 2 : index
    %c0_22 = arith.constant 0 : index
    %c0_23 = arith.constant 0 : index
    %27 = vector.load %arg3[%c2_21, %c0_22, %c0_23] : memref<9x8x4xbf16, #tpu.memory_space<vmem>>, vector<1x8x4xbf16>
    %28 = vector.shape_cast %27 : vector<1x8x4xbf16> to vector<8x4xbf16>
    %cst_24 = arith.constant dense<0.000000e+00> : vector<8x288xf32>
    %29 = tpu.matmul %28, %22, %cst_24 {dimension_numbers = #tpu.dot_dimension_numbers<[1], [0], [0], [1], [0, 0, 1, 1], [], []>} : vector<8x4xbf16>, vector<4x288xbf16>, vector<8x288xf32> -> vector<8x288xf32>
    %30 = arith.addf %21, %29 : vector<8x288xf32>
    %31 = vector.extract_strided_slice %1 {offsets = [0, 18], sizes = [4, 288], strides = [1, 1]} : vector<4x342xbf16> to vector<4x288xbf16>
    %c3 = arith.constant 3 : index
    %c0_25 = arith.constant 0 : index
    %c0_26 = arith.constant 0 : index
    %32 = vector.load %arg2[%c3, %c0_25, %c0_26] : memref<9x8x4xbf16, #tpu.memory_space<vmem>>, vector<1x8x4xbf16>
    %33 = vector.shape_cast %32 : vector<1x8x4xbf16> to vector<8x4xbf16>
    %cst_27 = arith.constant dense<0.000000e+00> : vector<8x288xf32>
    %34 = tpu.matmul %33, %31, %cst_27 {dimension_numbers = #tpu.dot_dimension_numbers<[1], [0], [0], [1], [0, 0, 1, 1], [], []>} : vector<8x4xbf16>, vector<4x288xbf16>, vector<8x288xf32> -> vector<8x288xf32>
    %35 = arith.addf %26, %34 : vector<8x288xf32>
    %c3_28 = arith.constant 3 : index
    %c0_29 = arith.constant 0 : index
    %c0_30 = arith.constant 0 : index
    %36 = vector.load %arg3[%c3_28, %c0_29, %c0_30] : memref<9x8x4xbf16, #tpu.memory_space<vmem>>, vector<1x8x4xbf16>
    %37 = vector.shape_cast %36 : vector<1x8x4xbf16> to vector<8x4xbf16>
    %cst_31 = arith.constant dense<0.000000e+00> : vector<8x288xf32>
    %38 = tpu.matmul %37, %31, %cst_31 {dimension_numbers = #tpu.dot_dimension_numbers<[1], [0], [0], [1], [0, 0, 1, 1], [], []>} : vector<8x4xbf16>, vector<4x288xbf16>, vector<8x288xf32> -> vector<8x288xf32>
    %39 = arith.addf %30, %38 : vector<8x288xf32>
    %40 = vector.extract_strided_slice %1 {offsets = [0, 19], sizes = [4, 288], strides = [1, 1]} : vector<4x342xbf16> to vector<4x288xbf16>
    %c4 = arith.constant 4 : index
    %c0_32 = arith.constant 0 : index
    %c0_33 = arith.constant 0 : index
    %41 = vector.load %arg2[%c4, %c0_32, %c0_33] : memref<9x8x4xbf16, #tpu.memory_space<vmem>>, vector<1x8x4xbf16>
    %42 = vector.shape_cast %41 : vector<1x8x4xbf16> to vector<8x4xbf16>
    %cst_34 = arith.constant dense<0.000000e+00> : vector<8x288xf32>
    %43 = tpu.matmul %42, %40, %cst_34 {dimension_numbers = #tpu.dot_dimension_numbers<[1], [0], [0], [1], [0, 0, 1, 1], [], []>} : vector<8x4xbf16>, vector<4x288xbf16>, vector<8x288xf32> -> vector<8x288xf32>
    %44 = arith.addf %35, %43 : vector<8x288xf32>
    %c4_35 = arith.constant 4 : index
    %c0_36 = arith.constant 0 : index
    %c0_37 = arith.constant 0 : index
    %45 = vector.load %arg3[%c4_35, %c0_36, %c0_37] : memref<9x8x4xbf16, #tpu.memory_space<vmem>>, vector<1x8x4xbf16>
    %46 = vector.shape_cast %45 : vector<1x8x4xbf16> to vector<8x4xbf16>
    %cst_38 = arith.constant dense<0.000000e+00> : vector<8x288xf32>
    %47 = tpu.matmul %46, %40, %cst_38 {dimension_numbers = #tpu.dot_dimension_numbers<[1], [0], [0], [1], [0, 0, 1, 1], [], []>} : vector<8x4xbf16>, vector<4x288xbf16>, vector<8x288xf32> -> vector<8x288xf32>
    %48 = arith.addf %39, %47 : vector<8x288xf32>
    %49 = vector.extract_strided_slice %1 {offsets = [0, 20], sizes = [4, 288], strides = [1, 1]} : vector<4x342xbf16> to vector<4x288xbf16>
    %c5 = arith.constant 5 : index
    %c0_39 = arith.constant 0 : index
    %c0_40 = arith.constant 0 : index
    %50 = vector.load %arg2[%c5, %c0_39, %c0_40] : memref<9x8x4xbf16, #tpu.memory_space<vmem>>, vector<1x8x4xbf16>
    %51 = vector.shape_cast %50 : vector<1x8x4xbf16> to vector<8x4xbf16>
    %cst_41 = arith.constant dense<0.000000e+00> : vector<8x288xf32>
    %52 = tpu.matmul %51, %49, %cst_41 {dimension_numbers = #tpu.dot_dimension_numbers<[1], [0], [0], [1], [0, 0, 1, 1], [], []>} : vector<8x4xbf16>, vector<4x288xbf16>, vector<8x288xf32> -> vector<8x288xf32>
    %53 = arith.addf %44, %52 : vector<8x288xf32>
    %c5_42 = arith.constant 5 : index
    %c0_43 = arith.constant 0 : index
    %c0_44 = arith.constant 0 : index
    %54 = vector.load %arg3[%c5_42, %c0_43, %c0_44] : memref<9x8x4xbf16, #tpu.memory_space<vmem>>, vector<1x8x4xbf16>
    %55 = vector.shape_cast %54 : vector<1x8x4xbf16> to vector<8x4xbf16>
    %cst_45 = arith.constant dense<0.000000e+00> : vector<8x288xf32>
    %56 = tpu.matmul %55, %49, %cst_45 {dimension_numbers = #tpu.dot_dimension_numbers<[1], [0], [0], [1], [0, 0, 1, 1], [], []>} : vector<8x4xbf16>, vector<4x288xbf16>, vector<8x288xf32> -> vector<8x288xf32>
    %57 = arith.addf %48, %56 : vector<8x288xf32>
    %58 = vector.extract_strided_slice %1 {offsets = [0, 36], sizes = [4, 288], strides = [1, 1]} : vector<4x342xbf16> to vector<4x288xbf16>
    %c6 = arith.constant 6 : index
    %c0_46 = arith.constant 0 : index
    %c0_47 = arith.constant 0 : index
    %59 = vector.load %arg2[%c6, %c0_46, %c0_47] : memref<9x8x4xbf16, #tpu.memory_space<vmem>>, vector<1x8x4xbf16>
    %60 = vector.shape_cast %59 : vector<1x8x4xbf16> to vector<8x4xbf16>
    %cst_48 = arith.constant dense<0.000000e+00> : vector<8x288xf32>
    %61 = tpu.matmul %60, %58, %cst_48 {dimension_numbers = #tpu.dot_dimension_numbers<[1], [0], [0], [1], [0, 0, 1, 1], [], []>} : vector<8x4xbf16>, vector<4x288xbf16>, vector<8x288xf32> -> vector<8x288xf32>
    %62 = arith.addf %53, %61 : vector<8x288xf32>
    %c6_49 = arith.constant 6 : index
    %c0_50 = arith.constant 0 : index
    %c0_51 = arith.constant 0 : index
    %63 = vector.load %arg3[%c6_49, %c0_50, %c0_51] : memref<9x8x4xbf16, #tpu.memory_space<vmem>>, vector<1x8x4xbf16>
    %64 = vector.shape_cast %63 : vector<1x8x4xbf16> to vector<8x4xbf16>
    %cst_52 = arith.constant dense<0.000000e+00> : vector<8x288xf32>
    %65 = tpu.matmul %64, %58, %cst_52 {dimension_numbers = #tpu.dot_dimension_numbers<[1], [0], [0], [1], [0, 0, 1, 1], [], []>} : vector<8x4xbf16>, vector<4x288xbf16>, vector<8x288xf32> -> vector<8x288xf32>
    %66 = arith.addf %57, %65 : vector<8x288xf32>
    %67 = vector.extract_strided_slice %1 {offsets = [0, 37], sizes = [4, 288], strides = [1, 1]} : vector<4x342xbf16> to vector<4x288xbf16>
    %c7 = arith.constant 7 : index
    %c0_53 = arith.constant 0 : index
    %c0_54 = arith.constant 0 : index
    %68 = vector.load %arg2[%c7, %c0_53, %c0_54] : memref<9x8x4xbf16, #tpu.memory_space<vmem>>, vector<1x8x4xbf16>
    %69 = vector.shape_cast %68 : vector<1x8x4xbf16> to vector<8x4xbf16>
    %cst_55 = arith.constant dense<0.000000e+00> : vector<8x288xf32>
    %70 = tpu.matmul %69, %67, %cst_55 {dimension_numbers = #tpu.dot_dimension_numbers<[1], [0], [0], [1], [0, 0, 1, 1], [], []>} : vector<8x4xbf16>, vector<4x288xbf16>, vector<8x288xf32> -> vector<8x288xf32>
    %71 = arith.addf %62, %70 : vector<8x288xf32>
    %c7_56 = arith.constant 7 : index
    %c0_57 = arith.constant 0 : index
    %c0_58 = arith.constant 0 : index
    %72 = vector.load %arg3[%c7_56, %c0_57, %c0_58] : memref<9x8x4xbf16, #tpu.memory_space<vmem>>, vector<1x8x4xbf16>
    %73 = vector.shape_cast %72 : vector<1x8x4xbf16> to vector<8x4xbf16>
    %cst_59 = arith.constant dense<0.000000e+00> : vector<8x288xf32>
    %74 = tpu.matmul %73, %67, %cst_59 {dimension_numbers = #tpu.dot_dimension_numbers<[1], [0], [0], [1], [0, 0, 1, 1], [], []>} : vector<8x4xbf16>, vector<4x288xbf16>, vector<8x288xf32> -> vector<8x288xf32>
    %75 = arith.addf %66, %74 : vector<8x288xf32>
    %76 = vector.extract_strided_slice %1 {offsets = [0, 38], sizes = [4, 288], strides = [1, 1]} : vector<4x342xbf16> to vector<4x288xbf16>
    %c8 = arith.constant 8 : index
    %c0_60 = arith.constant 0 : index
    %c0_61 = arith.constant 0 : index
    %77 = vector.load %arg2[%c8, %c0_60, %c0_61] : memref<9x8x4xbf16, #tpu.memory_space<vmem>>, vector<1x8x4xbf16>
    %78 = vector.shape_cast %77 : vector<1x8x4xbf16> to vector<8x4xbf16>
    %cst_62 = arith.constant dense<0.000000e+00> : vector<8x288xf32>
    %79 = tpu.matmul %78, %76, %cst_62 {dimension_numbers = #tpu.dot_dimension_numbers<[1], [0], [0], [1], [0, 0, 1, 1], [], []>} : vector<8x4xbf16>, vector<4x288xbf16>, vector<8x288xf32> -> vector<8x288xf32>
    %80 = arith.addf %71, %79 : vector<8x288xf32>
    %c8_63 = arith.constant 8 : index
    %c0_64 = arith.constant 0 : index
    %c0_65 = arith.constant 0 : index
    %81 = vector.load %arg3[%c8_63, %c0_64, %c0_65] : memref<9x8x4xbf16, #tpu.memory_space<vmem>>, vector<1x8x4xbf16>
    %82 = vector.shape_cast %81 : vector<1x8x4xbf16> to vector<8x4xbf16>
    %cst_66 = arith.constant dense<0.000000e+00> : vector<8x288xf32>
    %83 = tpu.matmul %82, %76, %cst_66 {dimension_numbers = #tpu.dot_dimension_numbers<[1], [0], [0], [1], [0, 0, 1, 1], [], []>} : vector<8x4xbf16>, vector<4x288xbf16>, vector<8x288xf32> -> vector<8x288xf32>
    %84 = arith.addf %75, %83 : vector<8x288xf32>
    %c0_67 = arith.constant 0 : index
    %c0_68 = arith.constant 0 : index
    %85 = vector.load %arg4[%c0_67, %c0_68] : memref<8x1xf32, #tpu.memory_space<vmem>>, vector<8x1xf32>
    %86 = vector.broadcast %85 : vector<8x1xf32> to vector<8x288xf32>
    %87 = arith.addf %80, %86 : vector<8x288xf32>
    %c0_69 = arith.constant 0 : index
    %c0_70 = arith.constant 0 : index
    %88 = vector.load %arg5[%c0_69, %c0_70] : memref<8x1xf32, #tpu.memory_space<vmem>>, vector<8x1xf32>
    %89 = vector.broadcast %88 : vector<8x1xf32> to vector<8x288xf32>
    %90 = arith.addf %84, %89 : vector<8x288xf32>
    %cst_71 = arith.constant 0.000000e+00 : f32
    %91 = vector.broadcast %cst_71 : f32 to vector<8x288xf32>
    %92 = arith.cmpf oge, %87, %91 : vector<8x288xf32>
    %cst_72 = arith.constant 2.000000e-01 : f32
    %93 = vector.broadcast %cst_72 : f32 to vector<8x288xf32>
    %94 = arith.mulf %93, %87 : vector<8x288xf32>
    %95 = arith.select %92, %87, %94 : vector<8x288xi1>, vector<8x288xf32>
    %96 = arith.negf %90 : vector<8x288xf32>
    %97 = math.exp %96 : vector<8x288xf32>
    %cst_73 = arith.constant 1.000000e+00 : f32
    %98 = vector.broadcast %cst_73 : f32 to vector<8x288xf32>
    %99 = arith.addf %98, %97 : vector<8x288xf32>
    %100 = arith.divf %98, %99 : vector<8x288xf32>
    %101 = arith.mulf %95, %100 : vector<8x288xf32>
    %cst_74 = arith.constant 0.000000e+00 : f32
    %102 = vector.broadcast %cst_74 : f32 to vector<8x288xf32>
    %103 = arith.cmpf oge, %101, %102 : vector<8x288xf32>
    %cst_75 = arith.constant 2.000000e-01 : f32
    %104 = vector.broadcast %cst_75 : f32 to vector<8x288xf32>
    %105 = arith.mulf %104, %101 : vector<8x288xf32>
    %106 = arith.select %103, %101, %105 : vector<8x288xi1>, vector<8x288xf32>
    %107 = arith.mulf %106, %106 : vector<8x288xf32>
    %cst_76 = arith.constant dense<0.000000e+00> : vector<288xf32>
    %108 = vector.multi_reduction <add>, %107, %cst_76 [0] : vector<8x288xf32> to vector<288xf32>
    %109 = vector.shape_cast %108 : vector<288xf32> to vector<1x288xf32>
    %cst_77 = arith.constant 8.000000e+00 : f32
    %110 = vector.broadcast %cst_77 : f32 to vector<1x288xf32>
    %111 = arith.divf %109, %110 : vector<1x288xf32>
    %cst_78 = arith.constant 9.99999993E-9 : f32
    %112 = vector.broadcast %cst_78 : f32 to vector<1x288xf32>
    %113 = arith.addf %111, %112 : vector<1x288xf32>
    %114 = math.rsqrt %113 : vector<1x288xf32>
    %115 = vector.broadcast %114 : vector<1x288xf32> to vector<8x288xf32>
    %116 = arith.mulf %106, %115 : vector<8x288xf32>
    %c0_79 = arith.constant 0 : index
    %c0_80 = arith.constant 0 : index
    %c0_81 = arith.constant 0 : index
    %117 = vector.load %arg6[%c0_79, %c0_80, %c0_81] : memref<1x8x288xf32, #tpu.memory_space<vmem>>, vector<1x8x288xf32>
    %118 = vector.shape_cast %117 : vector<1x8x288xf32> to vector<8x288xf32>
    %119 = vector.shape_cast %116 : vector<8x288xf32> to vector<1x8x288xf32>
    tpu.vector_store %arg6[%c0_79, %c0_80, %c0_81], %119 {strides = array<i32>} : memref<1x8x288xf32, #tpu.memory_space<vmem>>, vector<1x8x288xf32>,
    return
  }
  func.func @transform_0(%arg0: i32) -> (i32, i32, i32) {
    %c0_i32 = arith.constant 0 : i32
    %c0_i32_0 = arith.constant 0 : i32
    %c0_i32_1 = arith.constant 0 : i32
    return %arg0, %c0_i32, %c0_i32_0 : i32, i32, i32
  }
  func.func @transform_1(%arg0: i32) -> (i32, i32, i32) {
    %c0_i32 = arith.constant 0 : i32
    %c0_i32_0 = arith.constant 0 : i32
    %c0_i32_1 = arith.constant 0 : i32
    %c0_i32_2 = arith.constant 0 : i32
    return %c0_i32, %c0_i32_0, %c0_i32_1 : i32, i32, i32
  }
  func.func @transform_2(%arg0: i32) -> (i32, i32, i32) {
    %c0_i32 = arith.constant 0 : i32
    %c0_i32_0 = arith.constant 0 : i32
    %c0_i32_1 = arith.constant 0 : i32
    %c0_i32_2 = arith.constant 0 : i32
    return %c0_i32, %c0_i32_0, %c0_i32_1 : i32, i32, i32
  }
  func.func @transform_3(%arg0: i32) -> (i32, i32) {
    %c0_i32 = arith.constant 0 : i32
    %c0_i32_0 = arith.constant 0 : i32
    %c0_i32_1 = arith.constant 0 : i32
    return %c0_i32, %c0_i32_0 : i32, i32
  }
  func.func @transform_4(%arg0: i32) -> (i32, i32) {
    %c0_i32 = arith.constant 0 : i32
    %c0_i32_0 = arith.constant 0 : i32
    %c0_i32_1 = arith.constant 0 : i32
    return %c0_i32, %c0_i32_0 : i32, i32
  }
  func.func @transform_5(%arg0: i32) -> (i32, i32, i32) {
    %c0_i32 = arith.constant 0 : i32
    %c0_i32_0 = arith.constant 0 : i32
    %c0_i32_1 = arith.constant 0 : i32
    return %arg0, %c0_i32, %c0_i32_0 : i32, i32, i32
  }
}

</mosaic_0001>

<bundles_post_ra>
// kernel: conv_act.1
= control target key start
LH: loop header
LB: loop body
LE: loop exit
PB: predicated region body
PF: predicated region fallthrough
CT: control target
= control target key end

     0   :  { %s2457_s18 = smov 0   ;;  %s2698_s0 = inlined_call_operand.vmem [shape: bf16[2,4,342], index: 0, kind: input, shape index: {}]   ;;  %s2699_s1 = inlined_call_operand.vmem [shape: bf16[9,8,4], index: 1, kind: input, shape index: {}]   ;;  %s2700_s2 = inlined_call_operand.vmem [shape: bf16[9,8,4], index: 2, kind: input, shape index: {}]   ;;  %s2701_s3 = inlined_call_operand.vmem [shape: f32[8,1], index: 3, kind: input, shape index: {}]   ;;  %s2702_s4 = inlined_call_operand.vmem [shape: f32[8,1], index: 4, kind: input, shape index: {}]   ;;  %s2703_s5 = inlined_call_operand.vmem [shape: f32[2,8,288], index: 5, kind: output, shape index: {}]  }
   0x1 LB: > { %s2138_s19 = sadd.s32 4294967295, %s2413_s18   ;;  %p2142_p0 = scmp.ge.s32.totalorder %s2413_s18, 1  ;;  %s2413_s18 = sphi %s2457_s18, %s15_s18  }
   0x2   : > { %p187_p1 = scmp.lt.s32.totalorder %s2413_s18, 3 }
   0x4   : > { %p188_p2 = pnand %p2142_p0, %p187_p1 }
   0x5   : > { %p215_p3 = scmp.lt.s32.totalorder (!%p188_p2), %s2138_s19, 1  ;;  %v236_v0 = vlaneseq (!%p188_p2)  ;;  %v2415_v1 = vmov (!%p188_p2), 1983009808   ;;  %v2416_v3 = vmov (!%p188_p2), 0.0   ;;  %vm2417_vm0 = vmmov (!%p188_p2), 0   ;;  %s2419_s24 = smov (!%p188_p2), 127  }
   0x6   : > { %191 = sbr.rel (%p188_p2) target bundleno = 560 (0x230), region = 40  ;;  %v234_v2 = vunpack.c.l.s4 (!%p188_p2), %v2415_v1  ;;  %2256 = vmatprep.subr.bf16.mxu1 (!%p188_p2), %v2416_v3  ;;  %2258 = vmatprep.mubr.msk.bf16.mxu1 (!%p188_p2), %vm2417_vm0, %v2416_v3  ;;  %v2418_v6 = vmov (!%p188_p2), 0   ;;  %s2420_s25 = smov (!%p188_p2), 126   ;;  %vm261_vm1 = vcmask (!%p188_p2), 1041408   ;;  %vm254_vm2 = vcmask (!%p188_p2), 1039360   ;;  %v1987_v1 = vld [vmem:[%s2701_s3] sm:$0xff] (!%p188_p2) }
   0x7   : > { %v237_v4 = vshrl.u32 (!%p188_p2), %v236_v0, 7  ;;  %303 = vmatprep.mubr.bf16.mxu0 (!%p188_p2), %v2418_v6  ;;  %2387 = vset.pattern.permute.xlu1 (!%p188_p2), %v2418_v6  ;;  %s2421_s26 = smov (!%p188_p2), 110   ;;  %s2422_s27 = smov (!%p188_p2), 109   ;;  %v2145_v17 = vld [vmem:[%s2699_s1 + $0x4] sm:$0xf] (!%p188_p2)  ;;  %vm257_vm3 = vcmask (!%p188_p2), 31744  }
   0x8   : > { %v235_v5 = vunpack.c.0.s8 (!%p188_p2), %v234_v2  ;;  %2386 = vset.pattern.permute.xlu0 (!%p188_p2), %v2418_v6  ;;  %s2423_s28 = smov (!%p188_p2), 108   ;;  %s2424_s29 = smov (!%p188_p2), 92   ;;  %v227_v23 = vld [vmem:[%s2699_s1] sm:$0xf] (!%p188_p2)  ;;  %v2152_v25 = vld [vmem:[%s2700_s2 + $0x4] sm:$0xf] (!%p188_p2) }
   0x9   : > { %s2425_s30 = smov (!%p188_p2), 91   ;;  %s2426_s6 = smov (!%p188_p2), 90   ;;  %vm623_vm4 = vcmask (!%p188_p2), 1031168   ;;  %v228_v29 = vld [vmem:[%s2700_s2] sm:$0xf] (!%p188_p2)  ;;  %vm819_vm5 = vcmask (!%p188_p2), 900096  }
   0xa   : > { %v238_v7 = vsub.s32 (!%p188_p2), %v235_v5, %v237_v4  ;;  %v2159_v34 = vld [vmem:[%s2699_s1 + $0x8] sm:$0xf] (!%p188_p2)  ;;  %v2167_v43 = vld [vmem:[%s2699_s1 + $0xc] sm:$0xf] (!%p188_p2)  ;;  %vm1015_vm6 = vcmask (!%p188_p2), 891904   ;;  %vm1211_vm7 = vcmask (!%p188_p2), 883712  }
   0xb   : > { %v2163_v38 = vld [vmem:[%s2700_s2 + $0x8] sm:$0xf] (!%p188_p2)  ;;  %v2171_v47 = vld [vmem:[%s2700_s2 + $0xc] sm:$0xf] (!%p188_p2)  ;;  %v2175_v52 = vld [vmem:[%s2699_s1 + $0x10] sm:$0xf] (!%p188_p2) }
   0xc   : > { %v2179_v56 = vld [vmem:[%s2700_s2 + $0x10] sm:$0xf] (!%p188_p2)  ;;  %v2183_v61 = vld [vmem:[%s2699_s1 + $0x14] sm:$0xf] (!%p188_p2)  ;;  %vm1407_vm8 = vcmask (!%p188_p2), 752640   ;;  %vm1603_vm9 = vcmask (!%p188_p2), 744448  }
   0xd   : > { %s2705_s19 = smov (!%p215_p3, %s2138_s19), 1  ;;  %v2187_v2 = vld [vmem:[%s2700_s2 + $0x14] sm:$0xf]  ;;  %vm1799_vm10 = vcmask 736256   ;;  %vm2059_vm15 = vcmask 261120  }
   0xe   : > { %s2364_s20 = smul.u32 6, %s2705_s19 }
  0x10   : > { %s219_s23 = scalar_lea.vmem %s2698_s0, %s2364_s20 }
  0x11   : > { %v226_v8 = vld [vmem:[%s219_s23] sm:$0x3f] }
  0x12   : > { %v239_v9 = vrot.slane %v226_v8, %v238_v7  ;;  %v232_v10 = vcombine.high %v226_v8, %v226_v8 }
  0x14   : > { %248 = vrot.lane.b32.xlu0 %v239_v9, %s2419_s24  ;;  %v246_v11 = vrot.slane %v232_v10, %v238_v7  ;;  %v2477_v12 = vcombine.high %v239_v9, %v239_v9  ;;  %v356_v22 = vsel %vm261_vm1, %v239_v9, 0  ;;  %v2191_v10 = vld [vmem:[%s2699_s1 + $0x18] sm:$0xf] }
  0x16   : > { %252 = vrot.lane.b32.xlu1 %v246_v11, %s2419_s24  ;;  %v362_v20 = vsel %vm261_vm1, %v246_v11, 0 }
  0x18   : > { %250 = vrot.lane.b32.xlu0 %v2477_v12, %s2419_s24 }
  0x1a   : > { %617 = vrot.lane.b32.xlu1 %v239_v9, %s2420_s25 }
  0x1c   : > { %619 = vrot.lane.b32.xlu0 %v2477_v12, %s2420_s25 }
  0x1e   : > { %621 = vrot.lane.b32.xlu1 %v246_v11, %s2420_s25 }
  0x20   : > { %813 = vrot.lane.b32.xlu0 %v239_v9, %s2421_s26 }
  0x22   : > { %815 = vrot.lane.b32.xlu1 %v2477_v12, %s2421_s26 }
  0x24   : > { %817 = vrot.lane.b32.xlu0 %v246_v11, %s2421_s26  ;;  %s2365_s26 = smul.u32 24, %s2705_s19 }
  0x26   : > { %1009 = vrot.lane.b32.xlu1 %v239_v9, %s2422_s27 }
  0x28   : > { %1011 = vrot.lane.b32.xlu0 %v2477_v12, %s2422_s27 }
  0x2a   : > { %1013 = vrot.lane.b32.xlu1 %v246_v11, %s2422_s27 }
  0x2c   : > { %1205 = vrot.lane.b32.xlu0 %v239_v9, %s2423_s28 }
  0x2e   : > { %1207 = vrot.lane.b32.xlu1 %v2477_v12, %s2423_s28 }
  0x30   : > { %1209 = vrot.lane.b32.xlu0 %v246_v11, %s2423_s28 }
  0x32   : > { %1401 = vrot.lane.b32.xlu1 %v239_v9, %s2424_s29 }
  0x34   : > { %1403 = vrot.lane.b32.xlu0 %v2477_v12, %s2424_s29 }
  0x36   : > { %1405 = vrot.lane.b32.xlu1 %v246_v11, %s2424_s29  ;;  %s224_s29 = scalar_lea.vmem %s2703_s5, %s2365_s26 }
  0x38   : > { %1597 = vrot.lane.b32.xlu0 %v239_v9, %s2425_s30 }
  0x3a   : > { %1599 = vrot.lane.b32.xlu1 %v2477_v12, %s2425_s30 }
  0x3c   : > { %1601 = vrot.lane.b32.xlu0 %v246_v11, %s2425_s30 }
  0x3e   : > { %1793 = vrot.lane.b32.xlu1 %v239_v9, %s2426_s6  ;;  %v1996_v9 = vld [vmem:[%s2702_s4] sm:$0xff] }
  0x40   : > { %1795 = vrot.lane.b32.xlu0 %v2477_v12, %s2426_s6 }
  0x42   : > { %1797 = vrot.lane.b32.xlu1 %v246_v11, %s2426_s6 }
  0x44   : > { %1999 = vperm.xlu0 %2386, %v1996_v9  }
  0x46   : > { %1990 = vperm.xlu1 %2387, %v1987_v1  }
  0x86   : > { %v249_v13 = vpop.permute.xlu0 %248 }
  0x88   : > { %v253_v14 = vpop.permute.xlu1 %252 }
  0x89   : > { %v269_v15 = vsel %vm261_vm1, %v253_v14, 0 }
  0x8a   : > { %v251_v16 = vpop.permute.xlu0 %250  ;;  %2257 = vmatpush3.bf16.msra.mxu1 %v269_v15 }
  0x8b   : > { %v256_v18 = vsel %vm254_vm2, %v251_v16, %v253_v14  ;;  %v255_v19 = vsel %vm254_vm2, %v249_v13, %v251_v16  ;;  %2262 = vmatprep.subr.bf16.mxu1 %v2416_v3  ;;  %v2195_v14 = vld [vmem:[%s2700_s2 + $0x18] sm:$0xf] }
  0x8c   : > { %2146 = vmatprep.subr.msk.bf16.mxu0 %vm261_vm1, %v256_v18  ;;  %v263_v21 = vsel %vm261_vm1, %v255_v19, 0  ;;  %v618_v24 = vpop.permute.xlu1 %617  ;;  %v2199_v19 = vld [vmem:[%s2699_s1 + $0x1c] sm:$0xf] }
  0x8d   : > { %272 = vmatpush1.bf16.msra.mxu0 %v263_v21  ;;  %2259 = vmatmul.mubr.msk.bf16.vlgmr.msra.gmra.mrb[0].mxu1 %vm257_vm3, %v2145_v17 }
  0x8e   : > { %2149 = vmatprep.subr.msk.bf16.mxu0 %vm261_vm1, %v2477_v12  ;;  %2263 = vmatpush3.bf16.msra.mxu1 %v362_v20  ;;  %v620_v26 = vpop.permute.xlu0 %619 }
  0x8f   : > { %2264 = vmatprep.mubr.msk.bf16.mxu1 %vm2417_vm0, %v2416_v3  ;;  %2268 = vmatprep.subr.bf16.mxu1 %v2416_v3  ;;  %v624_v30 = vsel %vm623_vm4, %v618_v24, %v620_v26 }
  0x90   : > { %2147 = vmatmul.mubr.msk.bf16.vlgmr.msra.gmra.mrb[0].mxu0 %vm257_vm3, %v2145_v17  ;;  %v622_v27 = vpop.permute.xlu1 %621  ;;  %v630_v32 = vsel %vm261_vm1, %v624_v30, 0 }
  0x91   : > { %365 = vmatpush1.bf16.msra.mxu0 %v356_v22  ;;  %396 = vmatprep.mubr.bf16.mxu0 %v2418_v6  ;;  %v625_v28 = vsel %vm623_vm4, %v620_v26, %v622_v27  ;;  %v636_v31 = vsel %vm261_vm1, %v622_v27, 0  ;;  %v2207_v27 = vld [vmem:[%s2699_s1 + $0x20] sm:$0xf] }
  0x92   : > { %2153 = vmatprep.subr.msk.bf16.mxu0 %vm261_vm1, %v256_v18  ;;  %v814_v33 = vpop.permute.xlu0 %813 }
  0x94   : > { %v816_v35 = vpop.permute.xlu1 %815 }
  0x95   : > { %2265 = vmatmul.mubr.msk.bf16.vlgmr.msra.gmra.mrb[4].mxu1 %vm257_vm3, %v227_v23  ;;  %v820_v39 = vsel %vm819_vm5, %v814_v33, %v816_v35 }
  0x96   : > { %2269 = vmatpush3.bf16.msra.mxu1 %v269_v15  ;;  %2270 = vmatprep.mubr.msk.bf16.mxu1 %vm2417_vm0, %v2416_v3  ;;  %v818_v36 = vpop.permute.xlu0 %817  ;;  %v826_v41 = vsel %vm261_vm1, %v820_v39, 0 }
  0x97   : > { %2274 = vmatprep.subr.bf16.mxu1 %v2416_v3  ;;  %v821_v37 = vsel %vm819_vm5, %v816_v35, %v818_v36  ;;  %v832_v40 = vsel %vm261_vm1, %v818_v36, 0 }
  0x98   : > { %2150 = vmatmul.mubr.msk.bf16.vlgmr.msra.gmra.mrb[4].mxu0 %vm257_vm3, %v227_v23  ;;  %v1010_v42 = vpop.permute.xlu1 %1009  ;;  %v2203_v23 = vld [vmem:[%s2700_s2 + $0x1c] sm:$0xf] }
  0x99   : > { %451 = vmatpush1.bf16.msra.mxu0 %v263_v21  ;;  %482 = vmatprep.mubr.bf16.mxu0 %v2418_v6 }
  0x9a   : > { %2156 = vmatprep.subr.msk.bf16.mxu0 %vm261_vm1, %v2477_v12  ;;  %v1012_v44 = vpop.permute.xlu0 %1011 }
  0x9b   : > { %v1016_v48 = vsel %vm1015_vm6, %v1010_v42, %v1012_v44 }
  0x9c   : > { %v1014_v45 = vpop.permute.xlu1 %1013  ;;  %v1022_v50 = vsel %vm261_vm1, %v1016_v48, 0 }
  0x9d   : > { %2271 = vmatmul.mubr.msk.bf16.vlgmr.msra.gmra.mrb[8].mxu1 %vm257_vm3, %v2152_v25  ;;  %v1017_v46 = vsel %vm1015_vm6, %v1012_v44, %v1014_v45  ;;  %v1028_v49 = vsel %vm261_vm1, %v1014_v45, 0 }
  0x9e   : > { %2275 = vmatpush3.bf16.msra.mxu1 %v362_v20  ;;  %2276 = vmatprep.mubr.msk.bf16.mxu1 %vm2417_vm0, %v2416_v3  ;;  %v1206_v51 = vpop.permute.xlu0 %1205 }
  0x9f   : > { %2280 = vmatprep.subr.bf16.mxu1 %v2416_v3 }
  0xa0   : > { %2154 = vmatmul.mubr.msk.bf16.vlgmr.msra.gmra.mrb[8].mxu0 %vm257_vm3, %v2152_v25  ;;  %v1208_v53 = vpop.permute.xlu1 %1207 }
  0xa1   : > { %535 = vmatpush1.bf16.msra.mxu0 %v356_v22  ;;  %566 = vmatprep.mubr.bf16.mxu0 %v2418_v6  ;;  %v1212_v57 = vsel %vm1211_vm7, %v1206_v51, %v1208_v53 }
  0xa2   : > { %2160 = vmatprep.subr.msk.bf16.mxu0 %vm261_vm1, %v625_v28  ;;  %v1210_v54 = vpop.permute.xlu0 %1209  ;;  %v1218_v59 = vsel %vm261_vm1, %v1212_v57, 0 }
  0xa3   : > { %v1213_v55 = vsel %vm1211_vm7, %v1208_v53, %v1210_v54  ;;  %v1224_v58 = vsel %vm261_vm1, %v1210_v54, 0 }
  0xa4   : > { %v1402_v60 = vpop.permute.xlu1 %1401 }
  0xa5   : > { %2277 = vmatmul.mubr.msk.bf16.vlgmr.msra.gmra.mrb[12].mxu1 %vm257_vm3, %v228_v29 }
  0xa6   : > { %2281 = vmatpush3.bf16.msra.mxu1 %v636_v31  ;;  %2282 = vmatprep.mubr.msk.bf16.mxu1 %vm2417_vm0, %v2416_v3  ;;  %v1404_v62 = vpop.permute.xlu0 %1403 }
  0xa7   : > { %2286 = vmatprep.subr.bf16.mxu1 %v2416_v3  ;;  %v1408_v4 = vsel %vm1407_vm8, %v1402_v60, %v1404_v62 }
  0xa8   : > { %2157 = vmatmul.mubr.msk.bf16.vlgmr.msra.gmra.mrb[12].mxu0 %vm257_vm3, %v228_v29  ;;  %v1406_v63 = vpop.permute.xlu1 %1405  ;;  %v1414_v7 = vsel %vm261_vm1, %v1408_v4, 0 }
  0xa9   : > { %639 = vmatpush1.bf16.msra.mxu0 %v630_v32  ;;  %670 = vmatprep.mubr.bf16.mxu0 %v2418_v6  ;;  %v1409_v0 = vsel %vm1407_vm8, %v1404_v62, %v1406_v63  ;;  %v1420_v5 = vsel %vm261_vm1, %v1406_v63, 0 }
  0xaa   : > { %2164 = vmatprep.subr.msk.bf16.mxu0 %vm261_vm1, %v625_v28  ;;  %v1598_v8 = vpop.permute.xlu0 %1597  ;;  %v2211_v28 = vld [vmem:[%s2700_s2 + $0x20] sm:$0xf] }
  0xac   : > { %v1600_v11 = vpop.permute.xlu1 %1599 }
  0xad   : > { %2283 = vmatmul.mubr.msk.bf16.vlgmr.msra.gmra.mrb[16].mxu1 %vm257_vm3, %v2159_v34  ;;  %v1604_v15 = vsel %vm1603_vm9, %v1598_v8, %v1600_v11 }
  0xae   : > { %2287 = vmatpush3.bf16.msra.mxu1 %v636_v31  ;;  %2288 = vmatprep.mubr.msk.bf16.mxu1 %vm2417_vm0, %v2416_v3  ;;  %v1602_v12 = vpop.permute.xlu0 %1601  ;;  %v1610_v17 = vsel %vm261_vm1, %v1604_v15, 0 }
  0xaf   : > { %2292 = vmatprep.subr.bf16.mxu1 %v2416_v3  ;;  %v1605_v13 = vsel %vm1603_vm9, %v1600_v11, %v1602_v12  ;;  %v1616_v16 = vsel %vm261_vm1, %v1602_v12, 0 }
  0xb0   : > { %2161 = vmatmul.mubr.msk.bf16.vlgmr.msra.gmra.mrb[16].mxu0 %vm257_vm3, %v2159_v34  ;;  %v1794_v18 = vpop.permute.xlu1 %1793 }
  0xb1   : > { %728 = vmatpush1.bf16.msra.mxu0 %v630_v32  ;;  %759 = vmatprep.mubr.bf16.mxu0 %v2418_v6 }
  0xb2   : > { %2168 = vmatprep.subr.msk.bf16.mxu0 %vm261_vm1, %v821_v37  ;;  %v1796_v20 = vpop.permute.xlu0 %1795 }
  0xb3   : > { %v1800_v24 = vsel %vm1799_vm10, %v1794_v18, %v1796_v20 }
  0xb4   : > { %v1798_v21 = vpop.permute.xlu1 %1797  ;;  %v1806_v26 = vsel %vm261_vm1, %v1800_v24, 0 }
  0xb5   : > { %2289 = vmatmul.mubr.msk.bf16.vlgmr.msra.gmra.mrb[20].mxu1 %vm257_vm3, %v2163_v38  ;;  %v1801_v22 = vsel %vm1799_vm10, %v1796_v20, %v1798_v21  ;;  %v1812_v25 = vsel %vm261_vm1, %v1798_v21, 0 }
  0xb6   : > { %2293 = vmatpush3.bf16.msra.mxu1 %v832_v40  ;;  %2294 = vmatprep.mubr.msk.bf16.mxu1 %vm2417_vm0, %v2416_v3 }
  0xb7   : > { %2298 = vmatprep.subr.bf16.mxu1 %v2416_v3 }
  0xb8   : > { %2165 = vmatmul.mubr.msk.bf16.vlgmr.msra.gmra.mrb[20].mxu0 %vm257_vm3, %v2163_v38 }
  0xb9   : > { %835 = vmatpush1.bf16.msra.mxu0 %v826_v41  ;;  %866 = vmatprep.mubr.bf16.mxu0 %v2418_v6 }
  0xba   : > { %2172 = vmatprep.subr.msk.bf16.mxu0 %vm261_vm1, %v821_v37 }
  0xbd   : > { %2295 = vmatmul.mubr.msk.bf16.vlgmr.msra.gmra.mrb[24].mxu1 %vm257_vm3, %v2167_v43 }
  0xbe   : > { %2299 = vmatpush3.bf16.msra.mxu1 %v832_v40  ;;  %2300 = vmatprep.mubr.msk.bf16.mxu1 %vm2417_vm0, %v2416_v3 }
  0xbf   : > { %2304 = vmatprep.subr.bf16.mxu1 %v2416_v3 }
  0xc0   : > { %2169 = vmatmul.mubr.msk.bf16.vlgmr.msra.gmra.mrb[24].mxu0 %vm257_vm3, %v2167_v43 }
  0xc1   : > { %924 = vmatpush1.bf16.msra.mxu0 %v826_v41  ;;  %955 = vmatprep.mubr.bf16.mxu0 %v2418_v6 }
  0xc2   : > { %2176 = vmatprep.subr.msk.bf16.mxu0 %vm261_vm1, %v1017_v46 }
  0xc5   : > { %2301 = vmatmul.mubr.msk.bf16.vlgmr.msra.gmra.mrb[28].mxu1 %vm257_vm3, %v2171_v47 }
  0xc6   : > { %2305 = vmatpush3.bf16.msra.mxu1 %v1028_v49  ;;  %2306 = vmatprep.mubr.msk.bf16.mxu1 %vm2417_vm0, %v2416_v3 }
  0xc7   : > { %2310 = vmatprep.subr.bf16.mxu1 %v2416_v3 }
  0xc8   : > { %2173 = vmatmul.mubr.msk.bf16.vlgmr.msra.gmra.mrb[28].mxu0 %vm257_vm3, %v2171_v47 }
  0xc9   : > { %1031 = vmatpush1.bf16.msra.mxu0 %v1022_v50  ;;  %1062 = vmatprep.mubr.bf16.mxu0 %v2418_v6 }
  0xca   : > { %2180 = vmatprep.subr.msk.bf16.mxu0 %vm261_vm1, %v1017_v46 }
  0xcd   : > { %2307 = vmatmul.mubr.msk.bf16.vlgmr.msra.gmra.mrb[32].mxu1 %vm257_vm3, %v2175_v52 }
  0xce   : > { %2311 = vmatpush3.bf16.msra.mxu1 %v1028_v49  ;;  %2312 = vmatprep.mubr.msk.bf16.mxu1 %vm2417_vm0, %v2416_v3 }
  0xcf   : > { %2316 = vmatprep.subr.bf16.mxu1 %v2416_v3 }
  0xd0   : > { %2177 = vmatmul.mubr.msk.bf16.vlgmr.msra.gmra.mrb[32].mxu0 %vm257_vm3, %v2175_v52 }
  0xd1   : > { %1120 = vmatpush1.bf16.msra.mxu0 %v1022_v50  ;;  %1151 = vmatprep.mubr.bf16.mxu0 %v2418_v6 }
  0xd2   : > { %2184 = vmatprep.subr.msk.bf16.mxu0 %vm261_vm1, %v1213_v55 }
  0xd5   : > { %2313 = vmatmul.mubr.msk.bf16.vlgmr.msra.gmra.mrb[36].mxu1 %vm257_vm3, %v2179_v56 }
  0xd6   : > { %2317 = vmatpush3.bf16.msra.mxu1 %v1224_v58  ;;  %2318 = vmatprep.mubr.msk.bf16.mxu1 %vm2417_vm0, %v2416_v3 }
  0xd7   : > { %2322 = vmatprep.subr.bf16.mxu1 %v2416_v3 }
  0xd8   : > { %2181 = vmatmul.mubr.msk.bf16.vlgmr.msra.gmra.mrb[36].mxu0 %vm257_vm3, %v2179_v56 }
  0xd9   : > { %1227 = vmatpush1.bf16.msra.mxu0 %v1218_v59  ;;  %1258 = vmatprep.mubr.bf16.mxu0 %v2418_v6 }
  0xda   : > { %2188 = vmatprep.subr.msk.bf16.mxu0 %vm261_vm1, %v1213_v55 }
  0xdd   : > { %2319 = vmatmul.mubr.msk.bf16.vlgmr.msra.gmra.mrb[40].mxu1 %vm257_vm3, %v2183_v61 }
  0xde   : > { %2323 = vmatpush3.bf16.msra.mxu1 %v1224_v58  ;;  %2324 = vmatprep.mubr.msk.bf16.mxu1 %vm2417_vm0, %v2416_v3 }
  0xdf   : > { %2328 = vmatprep.subr.bf16.mxu1 %v2416_v3 }
  0xe0   : > { %2185 = vmatmul.mubr.msk.bf16.vlgmr.msra.gmra.mrb[40].mxu0 %vm257_vm3, %v2183_v61 }
  0xe1   : > { %1316 = vmatpush1.bf16.msra.mxu0 %v1218_v59  ;;  %1347 = vmatprep.mubr.bf16.mxu0 %v2418_v6 }
  0xe2   : > { %2192 = vmatprep.subr.msk.bf16.mxu0 %vm261_vm1, %v1409_v0 }
  0xe5   : > { %2325 = vmatmul.mubr.msk.bf16.vlgmr.msra.gmra.mrb[44].mxu1 %vm257_vm3, %v2187_v2 }
  0xe6   : > { %2329 = vmatpush3.bf16.msra.mxu1 %v1420_v5  ;;  %2330 = vmatprep.mubr.msk.bf16.mxu1 %vm2417_vm0, %v2416_v3 }
  0xe7   : > { %2334 = vmatprep.subr.bf16.mxu1 %v2416_v3 }
  0xe8   : > { %2189 = vmatmul.mubr.msk.bf16.vlgmr.msra.gmra.mrb[44].mxu0 %vm257_vm3, %v2187_v2 }
  0xe9   : > { %1423 = vmatpush1.bf16.msra.mxu0 %v1414_v7  ;;  %1454 = vmatprep.mubr.bf16.mxu0 %v2418_v6 }
  0xea   : > { %2196 = vmatprep.subr.msk.bf16.mxu0 %vm261_vm1, %v1409_v0 }
  0xed   : > { %2331 = vmatmul.mubr.msk.bf16.vlgmr.msra.gmra.mrb[48].mxu1 %vm257_vm3, %v2191_v10 }
  0xee   : > { %2335 = vmatpush3.bf16.msra.mxu1 %v1420_v5  ;;  %2336 = vmatprep.mubr.msk.bf16.mxu1 %vm2417_vm0, %v2416_v3 }
  0xef   : > { %2340 = vmatprep.subr.bf16.mxu1 %v2416_v3 }
  0xf0   : > { %2193 = vmatmul.mubr.msk.bf16.vlgmr.msra.gmra.mrb[48].mxu0 %vm257_vm3, %v2191_v10 }
  0xf1   : > { %1512 = vmatpush1.bf16.msra.mxu0 %v1414_v7  ;;  %1543 = vmatprep.mubr.bf16.mxu0 %v2418_v6 }
  0xf2   : > { %2200 = vmatprep.subr.msk.bf16.mxu0 %vm261_vm1, %v1605_v13 }
  0xf5   : > { %2337 = vmatmul.mubr.msk.bf16.vlgmr.msra.gmra.mrb[52].mxu1 %vm257_vm3, %v2195_v14 }
  0xf6   : > { %2341 = vmatpush3.bf16.msra.mxu1 %v1616_v16  ;;  %2342 = vmatprep.mubr.msk.bf16.mxu1 %vm2417_vm0, %v2416_v3 }
  0xf7   : > { %2346 = vmatprep.subr.bf16.mxu1 %v2416_v3 }
  0xf8   : > { %2197 = vmatmul.mubr.msk.bf16.vlgmr.msra.gmra.mrb[52].mxu0 %vm257_vm3, %v2195_v14 }
  0xf9   : > { %1619 = vmatpush1.bf16.msra.mxu0 %v1610_v17  ;;  %1650 = vmatprep.mubr.bf16.mxu0 %v2418_v6 }
  0xfa   : > { %2204 = vmatprep.subr.msk.bf16.mxu0 %vm261_vm1, %v1605_v13 }
  0xfd   : > { %2343 = vmatmul.mubr.msk.bf16.vlgmr.msra.gmra.mrb[56].mxu1 %vm257_vm3, %v2199_v19 }
  0xfe   : > { %2347 = vmatpush3.bf16.msra.mxu1 %v1616_v16  ;;  %2348 = vmatprep.mubr.msk.bf16.mxu1 %vm2417_vm0, %v2416_v3 }
  0xff   : > { %2352 = vmatprep.subr.bf16.mxu1 %v2416_v3 }
 0x100   : > { %2201 = vmatmul.mubr.msk.bf16.vlgmr.msra.gmra.mrb[56].mxu0 %vm257_vm3, %v2199_v19 }
 0x101   : > { %1708 = vmatpush1.bf16.msra.mxu0 %v1610_v17  ;;  %1739 = vmatprep.mubr.bf16.mxu0 %v2418_v6 }
 0x102   : > { %2208 = vmatprep.subr.msk.bf16.mxu0 %vm261_vm1, %v1801_v22 }
 0x105   : > { %2349 = vmatmul.mubr.msk.bf16.vlgmr.msra.gmra.mrb[60].mxu1 %vm257_vm3, %v2203_v23 }
 0x106   : > { %2353 = vmatpush3.bf16.msra.mxu1 %v1812_v25  ;;  %2354 = vmatprep.mubr.msk.bf16.mxu1 %vm2417_vm0, %v2416_v3 }
 0x107   : > { %2358 = vmatprep.subr.bf16.mxu1 %v2416_v3 }
 0x108   : > { %2205 = vmatmul.mubr.msk.bf16.vlgmr.msra.gmra.mrb[60].mxu0 %vm257_vm3, %v2203_v23 }
 0x109   : > { %1815 = vmatpush1.bf16.msra.mxu0 %v1806_v26  ;;  %1846 = vmatprep.mubr.bf16.mxu0 %v2418_v6 }
 0x10a   : > { %2212 = vmatprep.subr.msk.bf16.mxu0 %vm261_vm1, %v1801_v22 }
 0x10d   : > { %2355 = vmatmul.mubr.msk.bf16.vlgmr.msra.gmra.mrb[64].mxu1 %vm257_vm3, %v2207_v27 }
 0x10e   : > { %2359 = vmatpush3.bf16.msra.mxu1 %v1812_v25  ;;  %2360 = vmatprep.mubr.msk.bf16.mxu1 %vm2417_vm0, %v2416_v3 }
 0x110   : > { %2209 = vmatmul.mubr.msk.bf16.vlgmr.msra.gmra.mrb[64].mxu0 %vm257_vm3, %v2207_v27 }
 0x111   : > { %1904 = vmatpush1.bf16.msra.mxu0 %v1806_v26  ;;  %1935 = vmatprep.mubr.bf16.mxu0 %v2418_v6 }
 0x115   : > { %2361 = vmatmul.mubr.msk.bf16.vlgmr.msra.gmra.mrb[68].mxu1 %vm257_vm3, %v2211_v28 }
 0x118   : > { %2213 = vmatmul.mubr.msk.bf16.vlgmr.msra.gmra.mrb[68].mxu0 %vm257_vm3, %v2211_v28 }
 0x160   : > { %v346_v29 = vpop.f32.mrb[0].mxu1 }
 0x161   : > { %v2260_v30 = vpop.f32.mrb[1].mxu1 }
 0x162   : > { %v349_v31 = vpop.f32.mrb[2].mxu1 }
 0x163   : > { %v305_v32 = vpop.f32.mrb[0].mxu0  ;;  %v2261_v33 = vpop.f32.mrb[3].mxu1 }
 0x164   : > { %v307_v34 = vpop.f32.mrb[1].mxu0 }
 0x165   : > { %v309_v3 = vpop.f32.mrb[2].mxu0 }
 0x166   : > { %v310_v35 = vpop.f32.mrb[3].mxu0 }
 0x168   : > { %v439_v36 = vpop.f32.mrb[4].mxu1 }
 0x169   : > { %v440_v37 = vadd.f32 %v439_v36, %v346_v29  ;;  %v2266_v38 = vpop.f32.mrb[5].mxu1 }
 0x16a   : > { %v442_v6 = vpop.f32.mrb[6].mxu1 }
 0x16b   : > { %v398_v39 = vpop.f32.mrb[4].mxu0  ;;  %v2267_v40 = vpop.f32.mrb[7].mxu1 }
 0x16c   : > { %v399_v41 = vadd.f32 %v398_v39, %v305_v32  ;;  %v400_v42 = vpop.f32.mrb[5].mxu0 }
 0x16d   : > { %v401_v43 = vadd.f32 %v400_v42, %v307_v34  ;;  %v402_v44 = vpop.f32.mrb[6].mxu0 }
 0x16e   : > { %v403_v45 = vpop.f32.mrb[7].mxu0 }
 0x170   : > { %v525_v46 = vpop.f32.mrb[8].mxu1 }
 0x171   : > { %v2272_v47 = vpop.f32.mrb[9].mxu1 }
 0x172   : > { %v528_v48 = vpop.f32.mrb[10].mxu1 }
 0x173   : > { %v484_v49 = vpop.f32.mrb[8].mxu0  ;;  %v2273_v50 = vpop.f32.mrb[11].mxu1 }
 0x174   : > { %v486_v51 = vpop.f32.mrb[9].mxu0 }
 0x175   : > { %v488_v52 = vpop.f32.mrb[10].mxu0 }
 0x176   : > { %v489_v53 = vpop.f32.mrb[11].mxu0 }
 0x178   : > { %v609_v54 = vpop.f32.mrb[12].mxu1 }
 0x179   : > { %v610_v55 = vadd.f32 %v609_v54, %v525_v46  ;;  %v2278_v56 = vpop.f32.mrb[13].mxu1 }
 0x17a   : > { %v612_v57 = vpop.f32.mrb[14].mxu1 }
 0x17b   : > { %v568_v58 = vpop.f32.mrb[12].mxu0  ;;  %v2279_v59 = vpop.f32.mrb[15].mxu1 }
 0x17c   : > { %v569_v60 = vadd.f32 %v568_v58, %v484_v49  ;;  %v570_v61 = vpop.f32.mrb[13].mxu0 }
 0x17d   : > { %v571_v62 = vadd.f32 %v570_v61, %v486_v51  ;;  %v572_v63 = vpop.f32.mrb[14].mxu0 }
 0x17e   : > { %v573_v0 = vpop.f32.mrb[15].mxu0 }
 0x180   : > { %v713_v1 = vpop.f32.mrb[16].mxu1 }
 0x181   : > { %v721_v2 = vadd.f32 %v713_v1, %v440_v37  ;;  %v2284_v4 = vpop.f32.mrb[17].mxu1 }
 0x182   : > { %v716_v5 = vpop.f32.mrb[18].mxu1 }
 0x183   : > { %v672_v7 = vpop.f32.mrb[16].mxu0  ;;  %v2285_v8 = vpop.f32.mrb[19].mxu1 }
 0x184   : > { %v719_v9 = vadd.f32 %v672_v7, %v399_v41  ;;  %v674_v10 = vpop.f32.mrb[17].mxu0 }
 0x185   : > { %v720_v11 = vadd.f32 %v674_v10, %v401_v43  ;;  %v676_v12 = vpop.f32.mrb[18].mxu0 }
 0x186   : > { %v677_v13 = vpop.f32.mrb[19].mxu0 }
 0x188   : > { %v802_v14 = vpop.f32.mrb[20].mxu1 }
 0x189   : > { %v810_v15 = vadd.f32 %v802_v14, %v610_v55  ;;  %v2290_v16 = vpop.f32.mrb[21].mxu1 }
 0x18a   : > { %v805_v17 = vpop.f32.mrb[22].mxu1 }
 0x18b   : > { %v761_v18 = vpop.f32.mrb[20].mxu0  ;;  %v2291_v19 = vpop.f32.mrb[23].mxu1 }
 0x18c   : > { %v808_v20 = vadd.f32 %v761_v18, %v569_v60  ;;  %v763_v21 = vpop.f32.mrb[21].mxu0 }
 0x18d   : > { %v809_v22 = vadd.f32 %v763_v21, %v571_v62  ;;  %v765_v23 = vpop.f32.mrb[22].mxu0 }
 0x18e   : > { %v766_v24 = vpop.f32.mrb[23].mxu0 }
 0x190   : > { %v909_v25 = vpop.f32.mrb[24].mxu1 }
 0x191   : > { %v917_v26 = vadd.f32 %v909_v25, %v721_v2  ;;  %v2296_v27 = vpop.f32.mrb[25].mxu1 }
 0x192   : > { %v912_v28 = vpop.f32.mrb[26].mxu1 }
 0x193   : > { %v868_v29 = vpop.f32.mrb[24].mxu0  ;;  %v2297_v30 = vpop.f32.mrb[27].mxu1 }
 0x194   : > { %v915_v31 = vadd.f32 %v868_v29, %v719_v9  ;;  %v870_v32 = vpop.f32.mrb[25].mxu0 }
 0x195   : > { %v916_v33 = vadd.f32 %v870_v32, %v720_v11  ;;  %v872_v34 = vpop.f32.mrb[26].mxu0 }
 0x196   : > { %v873_v3 = vpop.f32.mrb[27].mxu0 }
 0x198   : > { %v998_v35 = vpop.f32.mrb[28].mxu1 }
 0x199   : > { %v1006_v36 = vadd.f32 %v998_v35, %v810_v15  ;;  %v2302_v37 = vpop.f32.mrb[29].mxu1 }
 0x19a   : > { %v1001_v38 = vpop.f32.mrb[30].mxu1 }
 0x19b   : > { %v957_v6 = vpop.f32.mrb[28].mxu0  ;;  %v2303_v39 = vpop.f32.mrb[31].mxu1 }
 0x19c   : > { %v1004_v40 = vadd.f32 %v957_v6, %v808_v20  ;;  %v959_v41 = vpop.f32.mrb[29].mxu0 }
 0x19d   : > { %v1005_v42 = vadd.f32 %v959_v41, %v809_v22  ;;  %v961_v43 = vpop.f32.mrb[30].mxu0 }
 0x19e   : > { %v962_v44 = vpop.f32.mrb[31].mxu0 }
 0x1a0   : > { %v1105_v45 = vpop.f32.mrb[32].mxu1 }
 0x1a1   : > { %v1113_v46 = vadd.f32 %v1105_v45, %v917_v26  ;;  %v2308_v47 = vpop.f32.mrb[33].mxu1 }
 0x1a2   : > { %v1108_v48 = vpop.f32.mrb[34].mxu1 }
 0x1a3   : > { %v1064_v49 = vpop.f32.mrb[32].mxu0  ;;  %v2309_v50 = vpop.f32.mrb[35].mxu1 }
 0x1a4   : > { %v1111_v51 = vadd.f32 %v1064_v49, %v915_v31  ;;  %v1066_v52 = vpop.f32.mrb[33].mxu0 }
 0x1a5   : > { %v1112_v53 = vadd.f32 %v1066_v52, %v916_v33  ;;  %v1068_v54 = vpop.f32.mrb[34].mxu0 }
 0x1a6   : > { %v1069_v55 = vpop.f32.mrb[35].mxu0 }
 0x1a8   : > { %v1194_v56 = vpop.f32.mrb[36].mxu1 }
 0x1a9   : > { %v1202_v57 = vadd.f32 %v1194_v56, %v1006_v36  ;;  %v2314_v58 = vpop.f32.mrb[37].mxu1 }
 0x1aa   : > { %v1197_v59 = vpop.f32.mrb[38].mxu1 }
 0x1ab   : > { %v1153_v60 = vpop.f32.mrb[36].mxu0  ;;  %v2315_v61 = vpop.f32.mrb[39].mxu1 }
 0x1ac   : > { %v1200_v62 = vadd.f32 %v1153_v60, %v1004_v40  ;;  %v1155_v63 = vpop.f32.mrb[37].mxu0 }
 0x1ad   : > { %v1201_v0 = vadd.f32 %v1155_v63, %v1005_v42  ;;  %v1157_v1 = vpop.f32.mrb[38].mxu0 }
 0x1ae   : > { %v1158_v2 = vpop.f32.mrb[39].mxu0 }
 0x1b0   : > { %v1301_v4 = vpop.f32.mrb[40].mxu1 }
 0x1b1   : > { %v1309_v5 = vadd.f32 %v1301_v4, %v1113_v46  ;;  %v2320_v7 = vpop.f32.mrb[41].mxu1 }
 0x1b2   : > { %v1304_v8 = vpop.f32.mrb[42].mxu1 }
 0x1b3   : > { %v1260_v9 = vpop.f32.mrb[40].mxu0  ;;  %v2321_v10 = vpop.f32.mrb[43].mxu1 }
 0x1b4   : > { %v1307_v11 = vadd.f32 %v1260_v9, %v1111_v51  ;;  %v1262_v12 = vpop.f32.mrb[41].mxu0 }
 0x1b5   : > { %v1308_v13 = vadd.f32 %v1262_v12, %v1112_v53  ;;  %v1264_v14 = vpop.f32.mrb[42].mxu0 }
 0x1b6   : > { %v1265_v15 = vpop.f32.mrb[43].mxu0 }
 0x1b8   : > { %v1390_v16 = vpop.f32.mrb[44].mxu1 }
 0x1b9   : > { %v1398_v17 = vadd.f32 %v1390_v16, %v1202_v57  ;;  %v2326_v18 = vpop.f32.mrb[45].mxu1 }
 0x1ba   : > { %v1393_v19 = vpop.f32.mrb[46].mxu1 }
 0x1bb   : > { %v1349_v20 = vpop.f32.mrb[44].mxu0  ;;  %v2327_v21 = vpop.f32.mrb[47].mxu1 }
 0x1bc   : > { %v1396_v22 = vadd.f32 %v1349_v20, %v1200_v62  ;;  %v1351_v23 = vpop.f32.mrb[45].mxu0  ;;  %v2000_v19 = vpop.permute.xlu0 %1999 }
 0x1bd   : > { %v1397_v24 = vadd.f32 %v1351_v23, %v1201_v0  ;;  %v1353_v25 = vpop.f32.mrb[46].mxu0 }
 0x1be   : > { %v1354_v26 = vpop.f32.mrb[47].mxu0 }
 0x1c0   : > { %v1497_v27 = vpop.f32.mrb[48].mxu1 }
 0x1c1   : > { %v1505_v28 = vadd.f32 %v1497_v27, %v1309_v5  ;;  %v2332_v29 = vpop.f32.mrb[49].mxu1 }
 0x1c2   : > { %v1500_v30 = vpop.f32.mrb[50].mxu1 }
 0x1c3   : > { %v1456_v31 = vpop.f32.mrb[48].mxu0  ;;  %v2333_v32 = vpop.f32.mrb[51].mxu1 }
 0x1c4   : > { %v1503_v33 = vadd.f32 %v1456_v31, %v1307_v11  ;;  %v1458_v34 = vpop.f32.mrb[49].mxu0 }
 0x1c5   : > { %v1504_v3 = vadd.f32 %v1458_v34, %v1308_v13  ;;  %v1460_v35 = vpop.f32.mrb[50].mxu0 }
 0x1c6   : > { %v1461_v36 = vpop.f32.mrb[51].mxu0 }
 0x1c8   : > { %v1586_v37 = vpop.f32.mrb[52].mxu1 }
 0x1c9   : > { %v1594_v38 = vadd.f32 %v1586_v37, %v1398_v17  ;;  %v2338_v6 = vpop.f32.mrb[53].mxu1  ;;  %v1991_v37 = vpop.permute.xlu1 %1990 }
 0x1ca   : > { %v1589_v39 = vpop.f32.mrb[54].mxu1 }
 0x1cb   : > { %v1545_v40 = vpop.f32.mrb[52].mxu0  ;;  %v2339_v41 = vpop.f32.mrb[55].mxu1 }
 0x1cc   : > { %v1592_v42 = vadd.f32 %v1545_v40, %v1396_v22  ;;  %v1547_v43 = vpop.f32.mrb[53].mxu0 }
 0x1cd   : > { %v1593_v44 = vadd.f32 %v1547_v43, %v1397_v24  ;;  %v1549_v45 = vpop.f32.mrb[54].mxu0 }
 0x1ce   : > { %v1550_v46 = vpop.f32.mrb[55].mxu0 }
 0x1d0   : > { %v1693_v47 = vpop.f32.mrb[56].mxu1 }
 0x1d1   : > { %v1701_v48 = vadd.f32 %v1693_v47, %v1505_v28  ;;  %v2344_v49 = vpop.f32.mrb[57].mxu1 }
 0x1d2   : > { %v1696_v50 = vpop.f32.mrb[58].mxu1 }
 0x1d3   : > { %v1652_v51 = vpop.f32.mrb[56].mxu0  ;;  %v2345_v52 = vpop.f32.mrb[59].mxu1 }
 0x1d4   : > { %v1699_v53 = vadd.f32 %v1652_v51, %v1503_v33  ;;  %v1654_v54 = vpop.f32.mrb[57].mxu0 }
 0x1d5   : > { %v1700_v55 = vadd.f32 %v1654_v54, %v1504_v3  ;;  %v1656_v56 = vpop.f32.mrb[58].mxu0 }
 0x1d6   : > { %v1657_v57 = vpop.f32.mrb[59].mxu0 }
 0x1d8   : > { %v1782_v58 = vpop.f32.mrb[60].mxu1 }
 0x1d9   : > { %v1790_v59 = vadd.f32 %v1782_v58, %v1594_v38  ;;  %v2350_v60 = vpop.f32.mrb[61].mxu1 }
 0x1da   : > { %v1785_v61 = vpop.f32.mrb[62].mxu1 }
 0x1db   : > { %v1741_v62 = vpop.f32.mrb[60].mxu0  ;;  %v2351_v63 = vpop.f32.mrb[63].mxu1 }
 0x1dc   : > { %v1788_v0 = vadd.f32 %v1741_v62, %v1592_v42  ;;  %v1743_v1 = vpop.f32.mrb[61].mxu0 }
 0x1dd   : > { %v1789_v2 = vadd.f32 %v1743_v1, %v1593_v44  ;;  %v1745_v4 = vpop.f32.mrb[62].mxu0 }
 0x1de   : > { %v1746_v5 = vpop.f32.mrb[63].mxu0 }
 0x1e0   : > { %v1889_v7 = vpop.f32.mrb[64].mxu1 }
 0x1e1   : > { %v1897_v8 = vadd.f32 %v1889_v7, %v1701_v48  ;;  %v2356_v9 = vpop.f32.mrb[65].mxu1 }
 0x1e2   : > { %v1892_v10 = vpop.f32.mrb[66].mxu1 }
 0x1e3   : > { %v1848_v11 = vpop.f32.mrb[64].mxu0  ;;  %v2357_v12 = vpop.f32.mrb[67].mxu1  ;;  %v1995_v40 = vadd.f32 %v1991_v37, %v1897_v8 }
 0x1e4   : > { %v1895_v13 = vadd.f32 %v1848_v11, %v1699_v53  ;;  %v1850_v14 = vpop.f32.mrb[65].mxu0 }
 0x1e5   : > { %v1896_v15 = vadd.f32 %v1850_v14, %v1700_v55  ;;  %v1852_v16 = vpop.f32.mrb[66].mxu0  ;;  %v2010_v43 = vmul.f32 0.2, %v1995_v40  ;;  %vm2007_vm11 = vcmp.ge.f32.partialorder %v1995_v40, 0.0 }
 0x1e6   : > { %v1853_v17 = vpop.f32.mrb[67].mxu0  ;;  %v1993_v42 = vadd.f32 %v1991_v37, %v1895_v13 }
 0x1e7   : > { %v1994_v44 = vadd.f32 %v1991_v37, %v1896_v15  ;;  %v2013_v47 = vsel %vm2007_vm11, %v1995_v40, %v2010_v43 }
 0x1e8   : > { %v1978_v18 = vpop.f32.mrb[68].mxu1  ;;  %v2008_v45 = vmul.f32 0.2, %v1993_v42  ;;  %vm2005_vm12 = vcmp.ge.f32.partialorder %v1993_v42, 0.0 }
 0x1e9   : > { %v1986_v20 = vadd.f32 %v1978_v18, %v1790_v59  ;;  %v2362_v21 = vpop.f32.mrb[69].mxu1  ;;  %v2009_v48 = vmul.f32 0.2, %v1994_v44  ;;  %vm2006_vm13 = vcmp.ge.f32.partialorder %v1994_v44, 0.0 }
 0x1ea   : > { %v1981_v22 = vpop.f32.mrb[70].mxu1  ;;  %v2011_v51 = vsel %vm2005_vm12, %v1993_v42, %v2008_v45 }
 0x1eb   : > { %v2004_v23 = vadd.f32 %v2000_v19, %v1986_v20  ;;  %v1937_v24 = vpop.f32.mrb[68].mxu0  ;;  %v2363_v25 = vpop.f32.mrb[71].mxu1  ;;  %v2012_v54 = vsel %vm2006_vm13, %v1994_v44, %v2009_v48 }
 0x1ec   : > { %v1984_v26 = vadd.f32 %v1937_v24, %v1788_v0  ;;  %v1939_v27 = vpop.f32.mrb[69].mxu0 }
 0x1ed   : > { %v2217_v28 = vmul.f32 -1.442695, %v2004_v23  ;;  %v1985_v29 = vadd.f32 %v1939_v27, %v1789_v2  ;;  %v1941_v30 = vpop.f32.mrb[70].mxu0 }
 0x1ee   : > { %v2002_v31 = vadd.f32 %v2000_v19, %v1984_v26  ;;  %v1942_v32 = vpop.f32.mrb[71].mxu0 }
 0x1ef   : > { %2389 = vpow2.f32 %v2217_v28  ;;  %v2003_v33 = vadd.f32 %v2000_v19, %v1985_v29 }
 0x1f0   : > { %v2215_v34 = vmul.f32 -1.442695, %v2002_v31 }
 0x1f1   : > { %v2216_v3 = vmul.f32 -1.442695, %v2003_v33 }
 0x1f2   : > { %2391 = vpow2.f32 %v2215_v34 }
 0x1f3   : > { %2393 = vpow2.f32 %v2216_v3 }
 0x1f9   : > { %v2390_v35 = vpop.eup %2389 }
 0x1fa   : > { %v2025_v36 = vadd.f32 1.0, %v2390_v35 }
 0x1fc   : > { %v2392_v38 = vpop.eup %2391  ;;  %2395 = vrcp.f32 %v2025_v36 }
 0x1fd   : > { %v2394_v6 = vpop.eup %2393  ;;  %v2023_v39 = vadd.f32 1.0, %v2392_v38 }
 0x1fe   : > { %v2024_v41 = vadd.f32 1.0, %v2394_v6 }
 0x1ff   : > { %2397 = vrcp.f32 %v2023_v39 }
 0x200   : > { %2399 = vrcp.f32 %v2024_v41 }
 0x206   : > { %v2396_v46 = vpop.eup %2395 }
 0x207   : > { %v2034_v49 = vmul.f32 %v2396_v46, %v2013_v47 }
 0x209   : > { %v2398_v50 = vpop.eup %2397  ;;  %vm2037_vm14 = vcmp.ge.f32.partialorder %v2034_v49, 0.0  ;;  %v2040_v52 = vmul.f32 0.2, %v2034_v49 }
 0x20a   : > { %v2400_v53 = vpop.eup %2399  ;;  %v2032_v55 = vmul.f32 %v2398_v50, %v2011_v51 }
 0x20b   : > { %v2043_v56 = vsel %vm2037_vm14, %v2034_v49, %v2040_v52  ;;  %v2033_v57 = vmul.f32 %v2400_v53, %v2012_v54 }
 0x20c   : > { %v2046_v58 = vmul.f32 %v2043_v56, %v2043_v56  ;;  %vm2035_vm0 = vcmp.ge.f32.partialorder %v2032_v55, 0.0  ;;  %v2038_v59 = vmul.f32 0.2, %v2032_v55 }
 0x20d   : > { %vm2036_vm1 = vcmp.ge.f32.partialorder %v2033_v57, 0.0  ;;  %v2039_v60 = vmul.f32 0.2, %v2033_v57 }
 0x20e   : > { %v2060_v61 = vsel %vm2059_vm15, %v2046_v58, 0.0  ;;  %v2041_v62 = vsel %vm2035_vm0, %v2032_v55, %v2038_v59 }
 0x20f   : > { %v2061_v63 = vrot.slane %v2060_v61, 4  ;;  %v2044_v0 = vmul.f32 %v2041_v62, %v2041_v62  ;;  %v2042_v1 = vsel %vm2036_vm1, %v2033_v57, %v2039_v60 }
 0x210   : > { %v2045_v2 = vmul.f32 %v2042_v1, %v2042_v1 }
 0x211   : > { %v2062_v4 = vadd.f32 %v2061_v63, %v2060_v61  ;;  %v2047_v5 = vrot.slane %v2044_v0, 4 }
 0x212   : > { %v2053_v7 = vrot.slane %v2045_v2, 4 }
 0x213   : > { %v2063_v8 = vrot.slane %v2062_v4, 2  ;;  %v2048_v9 = vadd.f32 %v2047_v5, %v2044_v0 }
 0x214   : > { %v2054_v10 = vadd.f32 %v2053_v7, %v2045_v2 }
 0x215   : > { %v2064_v11 = vadd.f32 %v2063_v8, %v2062_v4  ;;  %v2049_v12 = vrot.slane %v2048_v9, 2 }
 0x216   : > { %v2055_v13 = vrot.slane %v2054_v10, 2 }
 0x217   : > { %v2065_v14 = vrot.slane %v2064_v11, 1  ;;  %v2050_v15 = vadd.f32 %v2049_v12, %v2048_v9 }
 0x218   : > { %v2056_v16 = vadd.f32 %v2055_v13, %v2054_v10 }
 0x219   : > { %v2066_v17 = vadd.f32 %v2065_v14, %v2064_v11  ;;  %v2051_v18 = vrot.slane %v2050_v15, 1 }
 0x21a   : > { %v2057_v19 = vrot.slane %v2056_v16, 1 }
 0x21b   : > { %v2070_v20 = vmul.f32 0.125, %v2066_v17  ;;  %v2052_v21 = vadd.f32 %v2051_v18, %v2050_v15 }
 0x21c   : > { %v2058_v22 = vadd.f32 %v2057_v19, %v2056_v16 }
 0x21d   : > { %v2073_v23 = vadd.f32 1e-08, %v2070_v20  ;;  %v2068_v24 = vmul.f32 0.125, %v2052_v21 }
 0x21e   : > { %v2069_v25 = vmul.f32 0.125, %v2058_v22 }
 0x21f   : > { %2401 = vrsqrt.f32 %v2073_v23  ;;  %v2071_v26 = vadd.f32 1e-08, %v2068_v24 }
 0x220   : > { %v2072_v27 = vadd.f32 1e-08, %v2069_v25 }
 0x221   : > { %2403 = vrsqrt.f32 %v2071_v26 }
 0x222   : > { %2405 = vrsqrt.f32 %v2072_v27 }
 0x229   : > { %v2402_v28 = vpop.eup %2401 }
 0x22a   : > { %v2079_v29 = vmul.f32 %v2402_v28, %v2043_v56 }
 0x22b   : > { %v2404_v30 = vpop.eup %2403 }
 0x22c   : > { %v2406_v31 = vpop.eup %2405  ;;  %2082 = vst.msk [vmem:[%s224_s29 + $0x10] sm:$0xff] %vm2059_vm15, %v2079_v29  ;;  %v2077_v32 = vmul.f32 %v2404_v30, %v2041_v62 }
 0x22d   : > { %v2078_v33 = vmul.f32 %v2406_v31, %v2042_v1 }
 0x22e   : > { %2080 = vst [vmem:[%s224_s29] sm:$0xff] %v2077_v32 }
 0x22f   : > { %2081 = vst [vmem:[%s224_s29 + $0x8] sm:$0xff] %v2078_v33 }
 0x230 PF: > { %s15_s18 = sadd.s32 1, %s2413_s18  }
 0x231   : > { %p12_p4 = scmp.ge.s32.totalorder %s15_s18, 4  }
 0x233   :  { %14 = sbr.rel (!%p12_p4) target bundleno = 1 (0x1), region = 86 }

</bundles_post_ra>
